<compile_context>
chip_gen: v5e
topology: v5e:2x2
jax: 0.10.0
libtpu: 0.0.40
codegen_flags: <defaults>
</compile_context>

<pallas_src>
import functools

import jax
import jax.numpy as jnp
from jax import lax
from jax.experimental import pallas as pl
from jax.experimental.pallas import tpu as pltpu

_LANES = 128
_CHUNK_ROWS = 32   # inner-loop rows; multiple of 8 (f32) and 16 (bf16) tiling


def _water_consistency_kernel(sic_ref, sod_ref, floe_ref, out_ref, *,
                              C, ts, valid_rows, need_mask):
    """One (batch, spatial-tile) grid step.

    sic_ref/sod_ref/floe_ref: (C, ts, 128) logits (batch dim squeezed), any
      float dtype; upcast to f32 in vregs.
    out_ref: (_CHUNK_ROWS, 128) f32 partial-sum block for this (n, l) point.
    """
    n_chunks = ts // _CHUNK_ROWS
    # Rows of this tile that are backed by real data (rest of the partial
    # trailing block is unspecified VMEM and must be masked out).
    rows_left = valid_rows - pl.program_id(1) * ts

    def chunk(i, acc):
        r = pl.multiple_of(i * _CHUNK_ROWS, _CHUNK_ROWS)

        def prob0(ref):
            # p0 = softmax(x)[0] = 1 / (1 + sum_{c>0} exp(x_c - x_0)).
            # Skips the max pass and the channel-0 exp; exact divide keeps the
            # f32 accuracy needed for the reference tolerance.
            x0 = ref[0, pl.ds(r, _CHUNK_ROWS), :].astype(jnp.float32)
            denom = jnp.ones_like(x0)
            for c in range(1, C):                     # C is small & static
                xc = ref[c, pl.ds(r, _CHUNK_ROWS), :].astype(jnp.float32)
                denom = denom + jnp.exp(xc - x0)
            return 1.0 / denom

        sic = prob0(sic_ref)
        sod = prob0(sod_ref)
        floe = prob0(floe_ref)
        d = (sic - sod) ** 2 + (sod - floe) ** 2 + (floe - sic) ** 2

        if need_mask:
            # Zero contributions from rows past the true data extent (the
            # unspecified region of a partial trailing block may be NaN/Inf).
            row = (lax.broadcasted_iota(jnp.int32, (_CHUNK_ROWS, _LANES), 0)
                   + i * _CHUNK_ROWS)
            d = jnp.where(row < rows_left, d, 0.0)

        return acc + d

    acc0 = jnp.zeros((_CHUNK_ROWS, _LANES), jnp.float32)
    unroll = 2 if n_chunks % 2 == 0 else 1
    out_ref[...] = lax.fori_loop(0, n_chunks, chunk, acc0, unroll=unroll)


def _vmem_capacity_bytes(default=64 * 1024 * 1024):
    try:
        return int(getattr(pltpu.get_tpu_info(), "vmem_capacity_bytes", default))
    except Exception:
        return default


def water_consistency_loss(sic_logits, sod_logits, floe_logits,
                           *, target_block_bytes=None):
    """Pallas implementation of WaterConsistencyLoss.forward.

    Args:
      sic_logits, sod_logits, floe_logits: (N, C, H, W) float arrays.
    Returns:
      scalar float32 loss.
    """
    N, C, H, W = sic_logits.shape
    assert sod_logits.shape == (N, C, H, W)
    assert floe_logits.shape == (N, C, H, W)

    # Stream inputs in their native (common) dtype; compute is f32 in-kernel.
    dtype = jnp.promote_types(jnp.promote_types(sic_logits.dtype,
                                                sod_logits.dtype),
                              floe_logits.dtype)
    itemsize = jnp.dtype(dtype).itemsize

    L = H * W
    Ls = pl.cdiv(L, _LANES)          # sublane rows of real data per (n, c)

    vmem_cap = _vmem_capacity_bytes()
    if target_block_bytes is None:
        # ~1/16 of physical VMEM per input block: 3 inputs x 2 pipeline buffers
        # ≈ 3/8 of VMEM, leaving headroom for outputs + Mosaic temporaries.
        # -> 4 MiB on v7x (64 MiB VMEM), 8 MiB on v5e/v6e (128 MiB VMEM).
        target_block_bytes = max(2 << 20, min(8 << 20, vmem_cap // 16))

    # Spatial tile: ts sublane rows, a multiple of _CHUNK_ROWS (which also
    # satisfies the (8,128) f32 and (16,128) bf16 tilings), capped by the
    # per-block byte budget and by the (rounded-up) data extent.
    rows_budget = max(_CHUNK_ROWS,
                      (target_block_bytes // (C * _LANES * itemsize))
                      // _CHUNK_ROWS * _CHUNK_ROWS)
    ts = min(rows_budget, pl.cdiv(Ls, _CHUNK_ROWS) * _CHUNK_ROWS)
    num_l = pl.cdiv(Ls, ts)
    need_mask = (Ls % ts) != 0       # trailing partial block -> mask in-kernel

    def prep(x):
        # Free reshape to the lane-dense layout; a zero pad is needed only when
        # H*W is not a multiple of 128 (identical zero pad in all three inputs
        # -> equal softmax probs -> contributes exactly 0 to the loss).
        x = x.astype(dtype).reshape(N, C, L)
        if Ls * _LANES != L:
            x = jnp.pad(x, ((0, 0), (0, 0), (0, Ls * _LANES - L)))
        return x.reshape(N, C, Ls, _LANES)

    sic_p, sod_p, floe_p = prep(sic_logits), prep(sod_logits), prep(floe_logits)

    in_spec = pl.BlockSpec((pl.Squeezed(), C, ts, _LANES),
                           lambda n, l: (n, 0, l, 0))
    out_spec = pl.BlockSpec((pl.Squeezed(), pl.Squeezed(), _CHUNK_ROWS, _LANES),
                            lambda n, l: (n, l, 0, 0))

    kernel = functools.partial(_water_consistency_kernel,
                               C=C, ts=ts, valid_rows=Ls, need_mask=need_mask)

    elems = N * Ls * _LANES
    cost = pl.CostEstimate(
        flops=int((6 * (C - 1) + 12) * elems),
        transcendentals=int(3 * (C - 1) * elems),
        bytes_accessed=int(3 * C * elems * itemsize
                           + N * num_l * _CHUNK_ROWS * _LANES * 4),
    )

    partials = pl.pallas_call(
        kernel,
        out_shape=jax.ShapeDtypeStruct((N, num_l, _CHUNK_ROWS, _LANES),
                                       jnp.float32),
        grid_spec=pltpu.PrefetchScalarGridSpec(
            num_scalar_prefetch=0,
            grid=(N, num_l),
            in_specs=[in_spec, in_spec, in_spec],
            out_specs=out_spec,
        ),
        compiler_params=pltpu.CompilerParams(
            # Every grid point writes its own partial block, so both axes are
            # independent: a v7x megacore can shard the spatial axis even for
            # N == 1.  No-op (and no harm) on single-TC v5e/v6e.
            dimension_semantics=("parallel", "parallel"),
            vmem_limit_bytes=min(96 << 20, (3 * vmem_cap) // 4),
        ),
        cost_estimate=cost,
    )(sic_p, sod_p, floe_p)

    # Final cross-lane reduction + mean over the true element count (padding
    # and masked rows contribute exactly 0).
    return jnp.sum(partials) * (1.0 / float(N * H * W))


def _reference(sic_logits, sod_logits, floe_logits):
    def prob0(x):
        return jax.nn.softmax(x, axis=1)[:, 0, :, :]
    sic, sod, floe = prob0(sic_logits), prob0(sod_logits), prob0(floe_logits)
    return jnp.mean((sic - sod) ** 2 + (sod - floe) ** 2 + (floe - sic) ** 2)


if __name__ == "__main__":
    key = jax.random.PRNGKey(0)
    k1, k2, k3 = jax.random.split(key, 3)
    N, C, H, W = 2, 4, 16, 16
    sic_logits = jax.random.normal(k1, (N, C, H, W), dtype=jnp.float32)
    sod_logits = jax.random.normal(k2, (N, C, H, W), dtype=jnp.float32)
    floe_logits = jax.random.normal(k3, (N, C, H, W), dtype=jnp.float32)

    loss = jax.block_until_ready(
        water_consistency_loss(sic_logits, sod_logits, floe_logits))
    ref = _reference(sic_logits, sod_logits, floe_logits)
    assert jnp.allclose(loss, ref, rtol=1e-5, atol=1e-6), (loss, ref)
    print("KERNEL_OK")
</pallas_src>

<mosaic_0001>
module attributes {stable_mosaic.version = 11 : i64} {
  func.func @_water_consistency_kernel(%arg0: i32, %arg1: i32, %arg2: memref<1x4x32x128xf32, #tpu.memory_space<vmem>>, %arg3: memref<1x4x32x128xf32, #tpu.memory_space<vmem>>, %arg4: memref<1x4x32x128xf32, #tpu.memory_space<vmem>>, %arg5: memref<1x1x32x128xf32, #tpu.memory_space<vmem>>) attributes {dimension_semantics = [#tpu.dimension_semantics<parallel>, #tpu.dimension_semantics<parallel>], iteration_bounds = array<i64: 2, 1>, scalar_prefetch = 0 : i64, scratch_operands = 0 : i64, tpu.core_type = #tpu.core_type<tc>, window_params = [{transform_indices = @transform_0, window_bounds = array<i64: 1, 4, 32, 128>}, {transform_indices = @transform_1, window_bounds = array<i64: 1, 4, 32, 128>}, {transform_indices = @transform_2, window_bounds = array<i64: 1, 4, 32, 128>}, {transform_indices = @transform_3, window_bounds = array<i64: 1, 1, 32, 128>}]} {
    %c32_i32 = arith.constant 32 : i32
    %0 = arith.muli %arg1, %c32_i32 : i32
    %c2_i32 = arith.constant 2 : i32
    %1 = arith.subi %c2_i32, %0 : i32
    %cst = arith.constant 0.000000e+00 : f32
    %2 = vector.broadcast %cst : f32 to vector<32x128xf32>
    %c0_i32 = arith.constant 0 : i32
    %c32_i32_0 = arith.constant 32 : i32
    %3 = arith.muli %c0_i32, %c32_i32_0 : i32
    %4 = tpu.assume_multiple %3, 32 : i32
    %c0 = arith.constant 0 : index
    %c0_1 = arith.constant 0 : index
    %5 = arith.index_cast %4 : i32 to index
    %c0_2 = arith.constant 0 : index
    %6 = vector.load %arg2[%c0, %c0_1, %5, %c0_2] : memref<1x4x32x128xf32, #tpu.memory_space<vmem>>, vector<1x1x32x128xf32>
    %7 = vector.shape_cast %6 : vector<1x1x32x128xf32> to vector<32x128xf32>
    %cst_3 = arith.constant 1.000000e+00 : f32
    %8 = vector.broadcast %cst_3 : f32 to vector<32x128xf32>
    %c0_4 = arith.constant 0 : index
    %c1 = arith.constant 1 : index
    %9 = arith.index_cast %4 : i32 to index
    %c0_5 = arith.constant 0 : index
    %10 = vector.load %arg2[%c0_4, %c1, %9, %c0_5] : memref<1x4x32x128xf32, #tpu.memory_space<vmem>>, vector<1x1x32x128xf32>
    %11 = vector.shape_cast %10 : vector<1x1x32x128xf32> to vector<32x128xf32>
    %12 = arith.subf %11, %7 : vector<32x128xf32>
    %13 = math.exp %12 : vector<32x128xf32>
    %14 = arith.addf %8, %13 : vector<32x128xf32>
    %c0_6 = arith.constant 0 : index
    %c2 = arith.constant 2 : index
    %15 = arith.index_cast %4 : i32 to index
    %c0_7 = arith.constant 0 : index
    %16 = vector.load %arg2[%c0_6, %c2, %15, %c0_7] : memref<1x4x32x128xf32, #tpu.memory_space<vmem>>, vector<1x1x32x128xf32>
    %17 = vector.shape_cast %16 : vector<1x1x32x128xf32> to vector<32x128xf32>
    %18 = arith.subf %17, %7 : vector<32x128xf32>
    %19 = math.exp %18 : vector<32x128xf32>
    %20 = arith.addf %14, %19 : vector<32x128xf32>
    %c0_8 = arith.constant 0 : index
    %c3 = arith.constant 3 : index
    %21 = arith.index_cast %4 : i32 to index
    %c0_9 = arith.constant 0 : index
    %22 = vector.load %arg2[%c0_8, %c3, %21, %c0_9] : memref<1x4x32x128xf32, #tpu.memory_space<vmem>>, vector<1x1x32x128xf32>
    %23 = vector.shape_cast %22 : vector<1x1x32x128xf32> to vector<32x128xf32>
    %24 = arith.subf %23, %7 : vector<32x128xf32>
    %25 = math.exp %24 : vector<32x128xf32>
    %26 = arith.addf %20, %25 : vector<32x128xf32>
    %cst_10 = arith.constant 1.000000e+00 : f32
    %27 = vector.broadcast %cst_10 : f32 to vector<32x128xf32>
    %28 = arith.divf %27, %26 : vector<32x128xf32>
    %c0_11 = arith.constant 0 : index
    %c0_12 = arith.constant 0 : index
    %29 = arith.index_cast %4 : i32 to index
    %c0_13 = arith.constant 0 : index
    %30 = vector.load %arg3[%c0_11, %c0_12, %29, %c0_13] : memref<1x4x32x128xf32, #tpu.memory_space<vmem>>, vector<1x1x32x128xf32>
    %31 = vector.shape_cast %30 : vector<1x1x32x128xf32> to vector<32x128xf32>
    %cst_14 = arith.constant 1.000000e+00 : f32
    %32 = vector.broadcast %cst_14 : f32 to vector<32x128xf32>
    %c0_15 = arith.constant 0 : index
    %c1_16 = arith.constant 1 : index
    %33 = arith.index_cast %4 : i32 to index
    %c0_17 = arith.constant 0 : index
    %34 = vector.load %arg3[%c0_15, %c1_16, %33, %c0_17] : memref<1x4x32x128xf32, #tpu.memory_space<vmem>>, vector<1x1x32x128xf32>
    %35 = vector.shape_cast %34 : vector<1x1x32x128xf32> to vector<32x128xf32>
    %36 = arith.subf %35, %31 : vector<32x128xf32>
    %37 = math.exp %36 : vector<32x128xf32>
    %38 = arith.addf %32, %37 : vector<32x128xf32>
    %c0_18 = arith.constant 0 : index
    %c2_19 = arith.constant 2 : index
    %39 = arith.index_cast %4 : i32 to index
    %c0_20 = arith.constant 0 : index
    %40 = vector.load %arg3[%c0_18, %c2_19, %39, %c0_20] : memref<1x4x32x128xf32, #tpu.memory_space<vmem>>, vector<1x1x32x128xf32>
    %41 = vector.shape_cast %40 : vector<1x1x32x128xf32> to vector<32x128xf32>
    %42 = arith.subf %41, %31 : vector<32x128xf32>
    %43 = math.exp %42 : vector<32x128xf32>
    %44 = arith.addf %38, %43 : vector<32x128xf32>
    %c0_21 = arith.constant 0 : index
    %c3_22 = arith.constant 3 : index
    %45 = arith.index_cast %4 : i32 to index
    %c0_23 = arith.constant 0 : index
    %46 = vector.load %arg3[%c0_21, %c3_22, %45, %c0_23] : memref<1x4x32x128xf32, #tpu.memory_space<vmem>>, vector<1x1x32x128xf32>
    %47 = vector.shape_cast %46 : vector<1x1x32x128xf32> to vector<32x128xf32>
    %48 = arith.subf %47, %31 : vector<32x128xf32>
    %49 = math.exp %48 : vector<32x128xf32>
    %50 = arith.addf %44, %49 : vector<32x128xf32>
    %cst_24 = arith.constant 1.000000e+00 : f32
    %51 = vector.broadcast %cst_24 : f32 to vector<32x128xf32>
    %52 = arith.divf %51, %50 : vector<32x128xf32>
    %c0_25 = arith.constant 0 : index
    %c0_26 = arith.constant 0 : index
    %53 = arith.index_cast %4 : i32 to index
    %c0_27 = arith.constant 0 : index
    %54 = vector.load %arg4[%c0_25, %c0_26, %53, %c0_27] : memref<1x4x32x128xf32, #tpu.memory_space<vmem>>, vector<1x1x32x128xf32>
    %55 = vector.shape_cast %54 : vector<1x1x32x128xf32> to vector<32x128xf32>
    %cst_28 = arith.constant 1.000000e+00 : f32
    %56 = vector.broadcast %cst_28 : f32 to vector<32x128xf32>
    %c0_29 = arith.constant 0 : index
    %c1_30 = arith.constant 1 : index
    %57 = arith.index_cast %4 : i32 to index
    %c0_31 = arith.constant 0 : index
    %58 = vector.load %arg4[%c0_29, %c1_30, %57, %c0_31] : memref<1x4x32x128xf32, #tpu.memory_space<vmem>>, vector<1x1x32x128xf32>
    %59 = vector.shape_cast %58 : vector<1x1x32x128xf32> to vector<32x128xf32>
    %60 = arith.subf %59, %55 : vector<32x128xf32>
    %61 = math.exp %60 : vector<32x128xf32>
    %62 = arith.addf %56, %61 : vector<32x128xf32>
    %c0_32 = arith.constant 0 : index
    %c2_33 = arith.constant 2 : index
    %63 = arith.index_cast %4 : i32 to index
    %c0_34 = arith.constant 0 : index
    %64 = vector.load %arg4[%c0_32, %c2_33, %63, %c0_34] : memref<1x4x32x128xf32, #tpu.memory_space<vmem>>, vector<1x1x32x128xf32>
    %65 = vector.shape_cast %64 : vector<1x1x32x128xf32> to vector<32x128xf32>
    %66 = arith.subf %65, %55 : vector<32x128xf32>
    %67 = math.exp %66 : vector<32x128xf32>
    %68 = arith.addf %62, %67 : vector<32x128xf32>
    %c0_35 = arith.constant 0 : index
    %c3_36 = arith.constant 3 : index
    %69 = arith.index_cast %4 : i32 to index
    %c0_37 = arith.constant 0 : index
    %70 = vector.load %arg4[%c0_35, %c3_36, %69, %c0_37] : memref<1x4x32x128xf32, #tpu.memory_space<vmem>>, vector<1x1x32x128xf32>
    %71 = vector.shape_cast %70 : vector<1x1x32x128xf32> to vector<32x128xf32>
    %72 = arith.subf %71, %55 : vector<32x128xf32>
    %73 = math.exp %72 : vector<32x128xf32>
    %74 = arith.addf %68, %73 : vector<32x128xf32>
    %cst_38 = arith.constant 1.000000e+00 : f32
    %75 = vector.broadcast %cst_38 : f32 to vector<32x128xf32>
    %76 = arith.divf %75, %74 : vector<32x128xf32>
    %77 = arith.subf %28, %52 : vector<32x128xf32>
    %78 = arith.mulf %77, %77 : vector<32x128xf32>
    %79 = arith.subf %52, %76 : vector<32x128xf32>
    %80 = arith.mulf %79, %79 : vector<32x128xf32>
    %81 = arith.addf %78, %80 : vector<32x128xf32>
    %82 = arith.subf %76, %28 : vector<32x128xf32>
    %83 = arith.mulf %82, %82 : vector<32x128xf32>
    %84 = arith.addf %81, %83 : vector<32x128xf32>
    %85 = tpu.iota {dimensions = array<i32: 0>} : vector<32x128xi32>
    %c32_i32_39 = arith.constant 32 : i32
    %86 = arith.muli %c0_i32, %c32_i32_39 : i32
    %87 = vector.broadcast %86 : i32 to vector<32x128xi32>
    %88 = arith.addi %85, %87 : vector<32x128xi32>
    %89 = vector.broadcast %1 : i32 to vector<32x128xi32>
    %90 = arith.cmpi slt, %88, %89 : vector<32x128xi32>
    %cst_40 = arith.constant 0.000000e+00 : f32
    %91 = vector.broadcast %cst_40 : f32 to vector<32x128xf32>
    %92 = arith.select %90, %84, %91 : vector<32x128xi1>, vector<32x128xf32>
    %93 = arith.addf %2, %92 : vector<32x128xf32>
    %c1_i32 = arith.constant 1 : i32
    %c0_41 = arith.constant 0 : index
    %c0_42 = arith.constant 0 : index
    %c0_43 = arith.constant 0 : index
    %c0_44 = arith.constant 0 : index
    %94 = vector.load %arg5[%c0_41, %c0_42, %c0_43, %c0_44] : memref<1x1x32x128xf32, #tpu.memory_space<vmem>>, vector<1x1x32x128xf32>
    %95 = vector.shape_cast %94 : vector<1x1x32x128xf32> to vector<32x128xf32>
    %96 = vector.shape_cast %93 : vector<32x128xf32> to vector<1x1x32x128xf32>
    tpu.vector_store %arg5[%c0_41, %c0_42, %c0_43, %c0_44], %96 {strides = array<i32>} : memref<1x1x32x128xf32, #tpu.memory_space<vmem>>, vector<1x1x32x128xf32>,
    return
  }
  func.func @transform_0(%arg0: i32, %arg1: i32) -> (i32, i32, i32, i32) {
    %c0_i32 = arith.constant 0 : i32
    %c0_i32_0 = arith.constant 0 : i32
    %c0_i32_1 = arith.constant 0 : i32
    return %arg0, %c0_i32, %arg1, %c0_i32_0 : i32, i32, i32, i32
  }
  func.func @transform_1(%arg0: i32, %arg1: i32) -> (i32, i32, i32, i32) {
    %c0_i32 = arith.constant 0 : i32
    %c0_i32_0 = arith.constant 0 : i32
    %c0_i32_1 = arith.constant 0 : i32
    return %arg0, %c0_i32, %arg1, %c0_i32_0 : i32, i32, i32, i32
  }
  func.func @transform_2(%arg0: i32, %arg1: i32) -> (i32, i32, i32, i32) {
    %c0_i32 = arith.constant 0 : i32
    %c0_i32_0 = arith.constant 0 : i32
    %c0_i32_1 = arith.constant 0 : i32
    return %arg0, %c0_i32, %arg1, %c0_i32_0 : i32, i32, i32, i32
  }
  func.func @transform_3(%arg0: i32, %arg1: i32) -> (i32, i32, i32, i32) {
    %c0_i32 = arith.constant 0 : i32
    %c0_i32_0 = arith.constant 0 : i32
    %c0_i32_1 = arith.constant 0 : i32
    return %arg0, %arg1, %c0_i32, %c0_i32_0 : i32, i32, i32, i32
  }
}

</mosaic_0001>

<bundles_post_ra>
// kernel: tpu_custom_call.1
= control target key start
LH: loop header
LB: loop body
LE: loop exit
PB: predicated region body
PF: predicated region fallthrough
CT: control target
= control target key end

     0   :  { %8 = vsyncpa [#allocation3], 0  ;;  %s1458_s0 = inlined_call_operand.hbm [shape: f32[2,4,2,128], index: 0, kind: input, shape index: {}]   ;;  %s1459_s1 = inlined_call_operand.hbm [shape: f32[2,4,2,128], index: 1, kind: input, shape index: {}]   ;;  %s1460_s2 = inlined_call_operand.hbm [shape: f32[2,4,2,128], index: 2, kind: input, shape index: {}]   ;;  %s1461_s3 = inlined_call_operand.hbm [shape: f32[2,1,32,128], index: 3, kind: output, shape index: {}]  }
   0x1   :  { %10 = vsyncpa [#allocation3 + $0x1], 0 }
   0x2   :  { %11 = vsyncpa [#allocation6], 0 }
   0x3   :  { %13 = vsyncpa [#allocation6 + $0x1], 0 }
   0x4   :  { %14 = vsyncpa [#allocation4], 0 }
   0x5   :  { %16 = vsyncpa [#allocation4 + $0x1], 0  ;;  %s1298_s12 = smov 0   ;;  %s1300_s13 = smov 0  }
   0x6   :  { %s1302_s14 = smov 0   ;;  %s1304_s15 = smov 0  }
   0x7   :  { %s1306_s16 = smov 0   ;;  %s1308_s17 = smov 0  }
   0x8 LB: > { %s1329_s18 = sadd.s32 4294967295, %s1258_s17   ;;  %s1004_s19 = sadd.s32 4294967294, %s1258_s17   ;;  %s1258_s17 = sphi %s1308_s17, %s22_s17   ;;  %s1254_s16 = sphi %s1306_s16, %s1477_s16   ;;  %s1250_s15 = sphi %s1304_s15, %s1476_s15   ;;  %s1246_s14 = sphi %s1302_s14, %s1475_s14   ;;  %s1242_s13 = sphi %s1300_s13, %s1474_s13   ;;  %s1238_s12 = sphi %s1298_s12, %s1473_s12  }
   0x9   : > { %s34_s20 = sadd.s32 1, %s1254_s16  ;;  %s43_s21 = sadd.s32 1, %s1246_s14 }
   0xa   : > { %p36_p0 = scmp.ge.s32.totalorder %s34_s20, 2  ;;  %p50_p1 = scmp.ne.s32.totalorder %s1246_s14, %s1242_s13 }
   0xb   : > { %p51_p2 = scmp.eq.s32.totalorder %s1258_s17, 0  ;;  %p56_p3 = scmp.ne.s32.totalorder %s1242_s13, %s1238_s12 }
   0xc   : > { %s1479_s20 = smov (%p36_p0, %s34_s20), 0  ;;  %p57_p5 = scmp.eq.s32.totalorder %s1329_s18, 0 }
   0xd   : > { %1463 = sst [smem:[#allocation18_spill]] %s1479_s20  ;;  %p1341_p4 = por %p51_p2, %p50_p1 }
   0xe   : > { %s38_s23 = ssub.s32 %s1254_s16, %s1479_s20  ;;  %p138_p6 = scmp.eq.s32.totalorder %s1329_s18, 1 }
   0xf   : > { %p41_p7 = scmp.eq.s32.totalorder %s38_s23, 0  ;;  %p1349_p8 = por %p57_p5, %p56_p3 }
  0x10   : > { %p1353_p9 = por %p138_p6, %p50_p1  ;;  %p144_p10 = scmp.eq.s32.totalorder %s1004_s19, 1 }
  0x11   : > { %s1358_s26 = scalar_select %p41_p7, %s1246_s14, %s43_s21  }
  0x12   : > { %p1360_p11 = por %p144_p10, %p56_p3  ;;  %p1006_p12 = scmp.ge.s32.totalorder %s1258_s17, 2 }
  0x13   : > { %1467 = sst [smem:[#allocation19_spill]] %s1358_s26 }
  0x14   : > { %160 = sbr.rel (%p1006_p12) target bundleno = 79 (0x4f), region = 16 }
  0x19   : > { %163 = sbr.rel (!%p1341_p4) target bundleno = 43 (0x2b), region = 20 }
  0x1e   : > { %s164_s28 = sand.u32 1, %s1246_s14  }
  0x1f   : > { %s1007_s29 = sshll.u32 %s164_s28, 7  ;;  %s165_s30 = scalar_lea.sflag [#allocation3], %s164_s28 }
  0x20   : > { %s168_s4 = scalar_lea.vmem [#allocation2], %s1007_s29 }
  0x21   : > { %174 = vsyncadd %s165_s30, 1920  ;;  %s1068_s5 = sshll.u32 %s1254_s16, 3  ;;  %s186_s6 = sld [smem:[#allocation0]]  }
  0x22   : > { %s179_s9 = scalar_lea.hbm %s1458_s0, %s1068_s5  ;;  %s196_s10 = sshll.u32 %s168_s4, 4  ;;  %s197_s10 = int_to_ptr.vmem [resolvable:$true] %s196_s10 }
  0x23   : > { %s194_s11 = sshll.u32 %s179_s9, 4  ;;  %s1260_s19 = smov 32   ;;  %s195_s11 = int_to_ptr.hbm [resolvable:$true] %s194_s11 }
  0x24   : > { %203 = sst [smem:[#allocation10]] %s1260_s19  ;;  %s1261_s21 = smov 512  }
  0x25   : > { %205 = sst [smem:[#allocation10 + $0x1]] %s1261_s21  ;;  %s1262_s20 = smov 1  }
  0x26   : > { %207 = sst [smem:[#allocation10 + $0x2]] %s1262_s20  ;;  %s1263_s29 = smov 2  }
  0x27   : > { %s1010_s23 = sshll.u32 %s186_s6, 26  ;;  %209 = sst [smem:[#allocation10 + $0x3]] %s1260_s19 }
  0x28   : > { %s1011_s28 = sadd.s32 134217728, %s1010_s23  ;;  %211 = sst [smem:[#allocation10 + $0x4]] %s1260_s19 }
  0x29   : > { %213 = sst [smem:[#allocation10 + $0x5]] %s1263_s29  ;;  %s1264_s26 = smov [#allocation9]  }
  0x2a   : > { %215 = dma.general %s195_s11, 128, %s197_s10, %s165_s30, %s1264_s26, [#allocation10], %s1011_s28, 0  }
  0x2b PF: > { %218 = sbr.rel (!%p1341_p4) target bundleno = 61 (0x3d), region = 24 }
  0x30   : > { %s219_s4 = sand.u32 1, %s1258_s17   ;;  %s221_s5 = sand.u32 1, %s1246_s14  }
  0x31   : > { %s1012_s7 = sshll.u32 %s221_s5, 7  ;;  %s220_s8 = scalar_lea.sflag [#allocation6], %s219_s4 }
  0x32   : > { %s223_s6 = scalar_lea.vmem [#allocation5], %s1012_s7 }
  0x33   : > { %229 = vsyncadd %s220_s8, 1920  ;;  %s1069_s20 = sshll.u32 %s1254_s16, 3  ;;  %s241_s9 = sld [smem:[#allocation0]]  }
  0x34   : > { %s234_s23 = scalar_lea.hbm %s1459_s1, %s1069_s20  ;;  %s251_s26 = sshll.u32 %s223_s6, 4  ;;  %s252_s26 = int_to_ptr.vmem [resolvable:$true] %s251_s26 }
  0x35   : > { %s249_s30 = sshll.u32 %s234_s23, 4  ;;  %s1265_s10 = smov 32   ;;  %s250_s30 = int_to_ptr.hbm [resolvable:$true] %s249_s30 }
  0x36   : > { %258 = sst [smem:[#allocation12]] %s1265_s10  ;;  %s1266_s11 = smov 512  }
  0x37   : > { %260 = sst [smem:[#allocation12 + $0x1]] %s1266_s11  ;;  %s1267_s29 = smov 1  }
  0x38   : > { %262 = sst [smem:[#allocation12 + $0x2]] %s1267_s29  ;;  %s1268_s5 = smov 2  }
  0x39   : > { %s1015_s28 = sshll.u32 %s241_s9, 26  ;;  %264 = sst [smem:[#allocation12 + $0x3]] %s1265_s10 }
  0x3a   : > { %s1016_s4 = sadd.s32 134217728, %s1015_s28  ;;  %266 = sst [smem:[#allocation12 + $0x4]] %s1265_s10 }
  0x3b   : > { %268 = sst [smem:[#allocation12 + $0x5]] %s1268_s5  ;;  %s1269_s7 = smov [#allocation11]  }
  0x3c   : > { %270 = dma.general %s250_s30, 128, %s252_s26, %s220_s8, %s1269_s7, [#allocation12], %s1016_s4, 0  }
  0x3d PF: > { %273 = sbr.rel (!%p1341_p4) target bundleno = 79 (0x4f), region = 28 }
  0x42   : > { %s274_s6 = sand.u32 1, %s1258_s17   ;;  %s276_s20 = sand.u32 1, %s1246_s14  }
  0x43   : > { %s1017_s19 = sshll.u32 %s276_s20, 7  ;;  %s275_s21 = scalar_lea.sflag [#allocation6], %s274_s6 }
  0x44   : > { %s278_s9 = scalar_lea.vmem [#allocation7], %s1017_s19 }
  0x45   : > { %284 = vsyncadd %s275_s21, 1920  ;;  %s1070_s23 = sshll.u32 %s1254_s16, 3  ;;  %s296_s11 = sld [smem:[#allocation0]]  }
  0x46   : > { %s289_s29 = scalar_lea.hbm %s1460_s2, %s1070_s23  ;;  %s306_s8 = sshll.u32 %s278_s9, 4  ;;  %s307_s8 = int_to_ptr.vmem [resolvable:$true] %s306_s8 }
  0x47   : > { %s304_s26 = sshll.u32 %s289_s29, 4  ;;  %s1270_s22 = smov 32   ;;  %s305_s26 = int_to_ptr.hbm [resolvable:$true] %s304_s26 }
  0x48   : > { %313 = sst [smem:[#allocation14]] %s1270_s22  ;;  %s1271_s30 = smov 512  }
  0x49   : > { %315 = sst [smem:[#allocation14 + $0x1]] %s1271_s30  ;;  %s1272_s5 = smov 1  }
  0x4a   : > { %317 = sst [smem:[#allocation14 + $0x2]] %s1272_s5  ;;  %s1273_s6 = smov 2  }
  0x4b   : > { %s1020_s4 = sshll.u32 %s296_s11, 26  ;;  %319 = sst [smem:[#allocation14 + $0x3]] %s1270_s22 }
  0x4c   : > { %s1021_s7 = sadd.s32 134217728, %s1020_s4  ;;  %321 = sst [smem:[#allocation14 + $0x4]] %s1270_s22 }
  0x4d   : > { %323 = sst [smem:[#allocation14 + $0x5]] %s1273_s6  ;;  %s1274_s20 = smov [#allocation13]  }
  0x4e   : > { %325 = dma.general %s305_s26, 128, %s307_s8, %s275_s21, %s1274_s20, [#allocation14], %s1021_s7, 0  }
  0x4f PF: > { %p1022_p13 = scmp.ge.s32.totalorder %s1258_s17, 1  ;;  %p327_p0 = scmp.lt.s32.totalorder %s1258_s17, 3 }
  0x51   : > { %p328_p1 = pnand %p1022_p13, %p327_p0 }
  0x52   : > { %s1393_s19 = sand.u32 (!%p328_p1), 1, %s1242_s13  }
  0x53   : > { %331 = sbr.rel (%p328_p1) target bundleno = 149 (0x95), region = 32  ;;  %s1023_s9 = sshll.u32 (!%p328_p1), %s1393_s19, 7 }
  0x54   : > { %s334_s23 = scalar_lea.sflag (!%p328_p1), [#allocation3], %s1393_s19  ;;  %s337_s11 = scalar_lea.vmem (!%p328_p1), [#allocation2], %s1023_s9 }
  0x58   : > { %1225 = dma.done.wait (%p1349_p8), %s334_s23, 2048  }
  0x59   : > { %1227 = vsyncadd (%p1349_p8), %s334_s23, 4294965248  ;;  %s343_s21 = sand.u32 1, %s1329_s18   ;;  %s347_s28 = scalar_lea.vmem [#allocation5], %s1023_s9 }
  0x5a   : > { %s344_s10 = scalar_lea.sflag [#allocation6], %s343_s21 }
  0x5b   : > { %1229 = dma.done.wait (%p1349_p8), %s344_s10, 4096  }
  0x5c   : > { %1231 = vsyncadd (%p1349_p8), %s344_s10, 4294963200  ;;  %v402_v0 = vld [vmem:[%s337_s11] sm:$0xff]  ;;  %s357_s18 = scalar_lea.vmem [#allocation7], %s1023_s9  ;;  %s1026_s24 = sshll.u32 %s1393_s19, 5  ;;  %v1275_v45 = vmov 0.0  }
  0x5d   : > { %v1027_v1 = vld [vmem:[%s337_s11 + $0x20] sm:$0xff]  ;;  %s1407_s29 = scalar_lea.vmem [#allocation8], %s1026_s24  ;;  %s1071_s8 = sshll.u32 %s1250_s15, 5 }
  0x5e   : > { %v1031_v2 = vld [vmem:[%s337_s11 + $0x40] sm:$0xff]  ;;  %v412_v3 = vsub.f32 %v1027_v1, %v402_v0  ;;  %837 = vst [vmem:[%s1407_s29 + $0x8] sm:$0xff] %v1275_v45  ;;  %s854_s30 = scalar_lea.hbm %s1461_s3, %s1071_s8  ;;  %s855_s4 = sshll.u32 %s1407_s29, 4  ;;  %s856_s4 = int_to_ptr.vmem [resolvable:$true] %s855_s4 }
  0x5f   : > { %v434_v4 = vsub.f32 %v1031_v2, %v402_v0  ;;  %v1035_v5 = vld [vmem:[%s337_s11 + $0x60] sm:$0xff]  ;;  %838 = vst [vmem:[%s1407_s29 + $0x10] sm:$0xff] %v1275_v45  ;;  %s857_s5 = sshll.u32 %s854_s30, 4  ;;  %s841_s15 = scalar_lea.sflag [#allocation4], %s1393_s19  ;;  %s858_s5 = int_to_ptr.hbm [resolvable:$true] %s857_s5 }
  0x60   : > { %v532_v6 = vld [vmem:[%s347_s28] sm:$0xff]  ;;  %v456_v8 = vsub.f32 %v1035_v5, %v402_v0  ;;  %v416_v13 = vmul.f32 1.442695, %v412_v3  ;;  %839 = vst [vmem:[%s1407_s29 + $0x18] sm:$0xff] %v1275_v45  ;;  %s1186_s7 = sshra.s32 %s858_s5, 4  ;;  %s1192_s23 = scalar_lea.hbm %s1461_s3, 64  ;;  %s1187_s7 = int_to_ptr.hbm [resolvable:$true] %s1186_s7 }
  0x61   : > { %v1039_v7 = vld [vmem:[%s347_s28 + $0x20] sm:$0xff]  ;;  %v438_v14 = vmul.f32 1.442695, %v434_v4  ;;  %s1188_s6 = scalar_lea.hbm %s1187_s7, 32  ;;  %p1193_p5 = scmp.lt.s32.totalorder %s1187_s7, %s1461_s3 }
  0x62   : > { %v541_v9 = vsub.f32 %v1039_v7, %v532_v6  ;;  %v1043_v10 = vld [vmem:[%s347_s28 + $0x40] sm:$0xff]  ;;  %v460_v19 = vmul.f32 1.442695, %v456_v8  ;;  %1148 = vpow2.f32 %v416_v13  ;;  %p1189_p2 = scmp.ne.s32.totalorder %s1187_s7, %s1188_s6  ;;  %p1194_p6 = scmp.lt.s32.totalorder %s1192_s23, %s1188_s6 }
  0x63   : > { %v1047_v11 = vld [vmem:[%s347_s28 + $0x60] sm:$0xff]  ;;  %v562_v15 = vsub.f32 %v1043_v10, %v532_v6  ;;  %1150 = vpow2.f32 %v438_v14 }
  0x64   : > { %v659_v12 = vld [vmem:[%s357_s18] sm:$0xff]  ;;  %v583_v16 = vsub.f32 %v1047_v11, %v532_v6  ;;  %v545_v20 = vmul.f32 1.442695, %v541_v9  ;;  %1152 = vpow2.f32 %v460_v19  ;;  %p1190_p3 = pnand %p1189_p2, %p1353_p9  ;;  %p1195_p7 = por %p1194_p6, %p1193_p5 }
  0x65   : > { %v1051_v17 = vld [vmem:[%s357_s18 + $0x20] sm:$0xff]  ;;  %v566_v23 = vmul.f32 1.442695, %v562_v15  ;;  %v818_v15 = vlaneseq }
  0x66   : > { %v1055_v18 = vld [vmem:[%s357_s18 + $0x40] sm:$0xff]  ;;  %v668_v21 = vsub.f32 %v1051_v17, %v659_v12  ;;  %v587_v25 = vmul.f32 1.442695, %v583_v16  ;;  %1154 = vpow2.f32 %v545_v20  ;;  %p1191_p4 = pneg %p1190_p3 }
  0x67   : > { %v1059_v22 = vld [vmem:[%s357_s18 + $0x60] sm:$0xff]  ;;  %v689_v24 = vsub.f32 %v1055_v18, %v659_v12  ;;  %1156 = vpow2.f32 %v566_v23 }
  0x68   : > { %v672_v26 = vmul.f32 1.442695, %v668_v21  ;;  %v710_v27 = vsub.f32 %v1059_v22, %v659_v12  ;;  %1158 = vpow2.f32 %v587_v25  ;;  %v1149_v29 = vpop.eup %1148  ;;  %v819_v21 = vshrl.u32 %v818_v15, 7  ;;  %p1196_p8 = pnand %p1195_p7, %p1191_p4 }
  0x69   : > { %v693_v28 = vmul.f32 1.442695, %v689_v24  ;;  %v1151_v31 = vpop.eup %1150  ;;  %v424_v32 = vadd.f32 1.0, %v1149_v29 }
  0x6a   : > { %1160 = vpow2.f32 %v672_v26  ;;  %v714_v30 = vmul.f32 1.442695, %v710_v27  ;;  %v1153_v33 = vpop.eup %1152  ;;  %vm824_vm12 = vcmp.lt.s32.totalorder %v819_v21, 2 }
  0x6b   : > { %1162 = vpow2.f32 %v693_v28  ;;  %v446_v35 = vadd.f32 %v1151_v31, %v424_v32 }
  0x6c   : > { %v1155_v34 = vpop.eup %1154  ;;  %1164 = vpow2.f32 %v714_v30 }
  0x6d   : > { %v1157_v36 = vpop.eup %1156  ;;  %v553_v37 = vadd.f32 1.0, %v1155_v34  ;;  %v468_v39 = vadd.f32 %v1153_v33, %v446_v35 }
  0x6e   : > { %v1159_v38 = vpop.eup %1158 }
  0x6f   : > { %v574_v41 = vadd.f32 %v1157_v36, %v553_v37  ;;  %1166 = vrcp.f32 %v468_v39  ;;  %vm477_vm0 = vweird.f32 %v468_v39  ;;  %v483_v53 = vand.u32 2147483648, %v468_v39 }
  0x70   : > { %v1161_v40 = vpop.eup %1160  ;;  %v481_v56 = vand.u32 2147483647, %v468_v39 }
  0x71   : > { %v1163_v42 = vpop.eup %1162  ;;  %v595_v43 = vadd.f32 %v1159_v38, %v574_v41  ;;  %v680_v44 = vadd.f32 1.0, %v1161_v40  ;;  %v484_v63 = vor.u32 1.1754944e-38, %v483_v53 }
  0x72   : > { %v1165_v46 = vpop.eup %1164  ;;  %vm482_vm5 = vcmp.eq.f32.partialorder %v481_v56, 8.507059e+37 }
  0x73   : > { %1168 = vrcp.f32 %v595_v43  ;;  %v701_v47 = vadd.f32 %v1163_v42, %v680_v44  ;;  %v610_v57 = vand.u32 2147483648, %v595_v43  ;;  %vm604_vm3 = vweird.f32 %v595_v43 }
  0x74   : > { %v608_v60 = vand.u32 2147483647, %v595_v43 }
  0x75   : > { %v1167_v48 = vpop.eup %1166  ;;  %v722_v49 = vadd.f32 %v1165_v46, %v701_v47  ;;  %v611_v2 = vor.u32 1.1754944e-38, %v610_v57 }
  0x76   : > { %v473_v50 = vmul.f32 %v1167_v48, %v468_v39  ;;  %vm478_vm1 = vweird.f32 %v1167_v48  ;;  %vm609_vm7 = vcmp.eq.f32.partialorder %v608_v60, 8.507059e+37 }
  0x77   : > { %1170 = vrcp.f32 %v722_v49  ;;  %vm1412_vm2 = vmor %vm477_vm0, %vm478_vm1  ;;  %v737_v5 = vand.u32 2147483648, %v722_v49  ;;  %vm731_vm8 = vweird.f32 %v722_v49  ;;  %v735_v7 = vand.u32 2147483647, %v722_v49 }
  0x78   : > { %v474_v52 = vsub.f32 1.0, %v473_v50 }
  0x79   : > { %v1169_v51 = vpop.eup %1168  ;;  %v738_v12 = vor.u32 1.1754944e-38, %v737_v5  ;;  %vm736_vm11 = vcmp.eq.f32.partialorder %v735_v7, 8.507059e+37 }
  0x7a   : > { %v600_v54 = vmul.f32 %v1169_v51, %v595_v43  ;;  %v475_v55 = vmul.f32 %v1167_v48, %v474_v52  ;;  %vm605_vm4 = vweird.f32 %v1169_v51 }
  0x7b   : > { %vm606_vm6 = vmor %vm604_vm3, %vm605_vm4 }
  0x7c   : > { %v601_v59 = vsub.f32 1.0, %v600_v54  ;;  %v476_v61 = vadd.f32 %v1167_v48, %v475_v55 }
  0x7d   : > { %v1171_v62 = vpop.eup %1170 }
  0x7e   : > { %v602_v0 = vmul.f32 %v1169_v51, %v601_v59  ;;  %v480_v1 = vsel %vm1412_vm2, %v1167_v48, %v476_v61  ;;  %v727_v3 = vmul.f32 %v1171_v62, %v722_v49  ;;  %vm732_vm9 = vweird.f32 %v1171_v62 }
  0x7f   : > { %v485_v8 = vsel %vm482_vm5, %v484_v63, %v480_v1  ;;  %vm733_vm10 = vmor %vm731_vm8, %vm732_vm9 }
  0x80   : > { %v603_v4 = vadd.f32 %v1169_v51, %v602_v0  ;;  %v728_v6 = vsub.f32 1.0, %v727_v3 }
  0x82   : > { %v607_v9 = vsel %vm606_vm6, %v1169_v51, %v603_v4  ;;  %v729_v11 = vmul.f32 %v1171_v62, %v728_v6 }
  0x83   : > { %v612_v10 = vsel %vm609_vm7, %v611_v2, %v607_v9 }
  0x84   : > { %v730_v13 = vadd.f32 %v1171_v62, %v729_v11  ;;  %v786_v14 = vsub.f32 %v485_v8, %v612_v10 }
  0x86   : > { %v734_v16 = vsel %vm733_vm10, %v1171_v62, %v730_v13  ;;  %v790_v18 = vmul.f32 %v786_v14, %v786_v14 }
  0x87   : > { %v739_v17 = vsel %vm736_vm11, %v738_v12, %v734_v16 }
  0x88   : > { %v794_v19 = vsub.f32 %v612_v10, %v739_v17  ;;  %v806_v20 = vsub.f32 %v739_v17, %v485_v8 }
  0x8a   : > { %v798_v22 = vmul.f32 %v794_v19, %v794_v19  ;;  %v810_v23 = vmul.f32 %v806_v20, %v806_v20 }
  0x8c   : > { %v802_v24 = vadd.f32 %v798_v22, %v790_v18 }
  0x8e   : > { %v814_v25 = vadd.f32 %v810_v23, %v802_v24 }
  0x90   : > { %v828_v26 = vsel %vm824_vm12, %v814_v25, 0.0 }
  0x91   : > { %836 = vst [vmem:[%s1407_s29] sm:$0xff] %v828_v26 }
  0x92   : > { %1199 = shalt.err (!%p1196_p8)
}
  0x93   : > { %s1276_s19 = smov 128   ;;  %s1277_s10 = smov 8  }
  0x94   : > { %1075 = dma.vmem_to_hbm [thread:$0]  (%p1353_p9), %s856_s4, 512, %s858_s5, %s841_s15, %s1276_s19, %s1276_s19, %s1277_s10  }
  0x95 PF: > { %s872_s28 = sand.u32 1, %s1238_s12   ;;  %p1078_p10 = pnand %p1006_p12, %p1360_p11 }
  0x96   : > { %s873_s18 = scalar_lea.sflag [#allocation4], %s872_s28 }
  0x97   : > { %p1079_p13 = pneg %p1078_p10 }
  0x99   : > { %1233 = dma.done.wait (%p1079_p13), %s873_s18, 512  }
  0x9a   : > { %1235 = vsyncadd (%p1079_p13), %s873_s18, 4294966784  ;;  %s22_s17 = sadd.s32 1, %s1258_s17   ;;  %s1471_s24 = sld [smem:[#allocation19_spill]] }
  0x9b   : > { %p19_p0 = scmp.ge.s32.totalorder %s22_s17, 4   ;;  %s1472_s25 = sld [smem:[#allocation18_spill]] }
  0x9c   : > { %s1473_s12 = smov %s1242_s13  ;;  %s1474_s13 = smov %s1246_s14 }
  0x9d   : > { %s1476_s15 = smov %s1254_s16  ;;  %21 = sbr.rel (!%p19_p0) target bundleno = 8 (0x8), region = 125 }
  0xa0   : > { %s1475_s14 = smov %s1471_s24 }
  0xa1   : > { %s1477_s16 = smov %s1472_s25 }
  0xa2   :  { %879 = vsyncpa [#allocation3], 1 }
  0xa3   :  { %881 = vsyncpa [#allocation3 + $0x1], 1 }
  0xa4   :  { %882 = vsyncpa [#allocation6], 1 }
  0xa5   :  { %884 = vsyncpa [#allocation6 + $0x1], 1 }
  0xa6   :  { %885 = vsyncpa [#allocation4], 1 }
  0xa7   :  { %887 = vsyncpa [#allocation4 + $0x1], 1 }

</bundles_post_ra>
